<compile_context>
chip_gen: v7x
topology: tpu7x:2x2x1
jax: 0.10.0
libtpu: 0.0.40
codegen_flags: <defaults>
</compile_context>

<pallas_src>
import math

import jax
import jax.numpy as jnp
from jax.experimental import pallas as pl
from jax.experimental.pallas import tpu as pltpu


def _round_up(x, m):
    return ((x + m - 1) // m) * m


def _mlp_kernel(x_ref, w1_ref, b1_ref, w2_ref, b2_ref, w3_ref, b3_ref, o_ref):
    # Layer 1: single (tb, 2D) @ (2D, 128) bf16 dot, f32 accumulation.
    h1 = jnp.dot(x_ref[...], w1_ref[...], preferred_element_type=jnp.float32)
    h1 = jnp.maximum(h1 + b1_ref[...], 0.0)                       # bias + ReLU (f32)

    # Layer 2: (tb,128) @ (128,64) bf16 dot, f32 accumulation.
    h2 = jnp.dot(h1.astype(jnp.bfloat16), w2_ref[...],
                 preferred_element_type=jnp.float32)
    h2 = jnp.maximum(h2 + b2_ref[...], 0.0)                       # bias + ReLU (f32)

    # Layer 3: N=1 output -> VPU multiply + XLU lane reduction (keeps MXU free).
    logit = jnp.sum(h2 * w3_ref[...], axis=-1, keepdims=True) + b3_ref[...]
    o_ref[...] = jax.nn.sigmoid(logit).astype(o_ref.dtype)        # Sigmoid (f32, EUP)


def combination_discriminator_forward(attr_features, obj_features, params,
                                      *, block_b=2048):
    """attr_features, obj_features: (B, D) float32.  Returns (B, 1) float32."""
    w1, b1, w2, b2, w3, b3 = params
    B, D = attr_features.shape
    H1 = w1.shape[1]          # 128
    H2 = w2.shape[1]          # 64

    # Cast weights for the MXU once; layer-3 / biases stay f32.
    w1_bf = w1.astype(jnp.bfloat16)            # (2D, 128)
    w2_bf = w2.astype(jnp.bfloat16)            # (128, 64)
    w3_row = w3.reshape(1, H2).astype(jnp.float32)   # (1, 64) row for VPU reduce

    # The concat (a new array regardless) is emitted directly in bf16 — this is
    # the only wrapper-level HBM pass over the activations and it feeds the
    # kernel with half the bytes of the old f32 path.
    x = jnp.concatenate([attr_features.astype(jnp.bfloat16),
                         obj_features.astype(jnp.bfloat16)], axis=-1)   # (B, 2D)

    # Batch tile: multiple of 16 (bf16 sublane packing), capped at block_b, and
    # capped at ceil(B/2) when B > 16 so v7x's two TensorCores both get work.
    tb = min(block_b, _round_up(B, 16))
    if B > 16:
        tb = min(tb, _round_up(pl.cdiv(B, 2), 16))
    Bp = _round_up(B, tb)
    if Bp != B:
        # Only pads the already-materialized bf16 concat (tiny; fuses with it).
        x = jnp.pad(x, ((0, Bp - B), (0, 0)))

    grid = (Bp // tb,)
    row_map = lambda i: (i, 0)       # activation / output tiles march down batch
    resident = lambda i: (0, 0)      # weights/biases stay VMEM-resident

    param_bytes = (2 * (w1_bf.size + w2_bf.size)
                   + 4 * (b1.size + b2.size + w3_row.size + b3.size))
    cost = pl.CostEstimate(
        flops=2 * Bp * (2 * D * H1 + H1 * H2 + H2),
        transcendentals=Bp,                                   # sigmoid
        bytes_accessed=Bp * (2 * D * 2 + 4) + param_bytes,
    )

    out = pl.pallas_call(
        _mlp_kernel,
        out_shape=jax.ShapeDtypeStruct((Bp, 1), jnp.float32),
        grid=grid,
        in_specs=[
            pl.BlockSpec((tb, 2 * D), row_map),    # x tile (bf16)
            pl.BlockSpec((2 * D, H1), resident),   # W1 (bf16)
            pl.BlockSpec((1, H1), resident),       # b1 (f32)
            pl.BlockSpec((H1, H2), resident),      # W2 (bf16)
            pl.BlockSpec((1, H2), resident),       # b2 (f32)
            pl.BlockSpec((1, H2), resident),       # W3 as a row (f32)
            pl.BlockSpec((1, 1), resident),        # b3 (f32)
        ],
        out_specs=pl.BlockSpec((tb, 1), row_map),
        compiler_params=pltpu.CompilerParams(
            dimension_semantics=("parallel",),     # shard batch across TCs (v7x)
            vmem_limit_bytes=32 * 1024 * 1024),    # ample headroom, safe on all gens
        cost_estimate=cost,
    )(x, w1_bf, b1, w2_bf, b2, w3_row, b3)

    return out[:B]


def init_params(feature_dim, key):
    """Deterministic PyTorch-style (kaiming-uniform) init for the 3 Linear layers."""
    dims = [(feature_dim * 2, 128), (128, 64), (64, 1)]
    params = []
    for fan_in, fan_out in dims:
        kw, kb, key = jax.random.split(key, 3)
        bound = 1.0 / math.sqrt(fan_in)
        # Stored as (in, out) so the kernel does x @ W (== PyTorch x @ W.T).
        w = jax.random.uniform(kw, (fan_in, fan_out), jnp.float32, -bound, bound)
        b = jax.random.uniform(kb, (1, fan_out), jnp.float32, -bound, bound)
        params.extend([w, b])
    return tuple(params)


def _reference(attr, obj, params):
    w1, b1, w2, b2, w3, b3 = params
    x = jnp.concatenate([attr, obj], axis=-1)
    h1 = jnp.maximum(x @ w1 + b1, 0.0)
    h2 = jnp.maximum(h1 @ w2 + b2, 0.0)
    return jax.nn.sigmoid(h2 @ w3 + b3)


if __name__ == "__main__":
    key = jax.random.PRNGKey(0)
    k_attr, k_obj, k_params, k_attr2, k_obj2 = jax.random.split(key, 5)

    feature_dim = 32
    params = init_params(feature_dim, k_params)

    # bf16 MXU feed -> loosened tolerance vs. the f32 reference.
    TOL = 2e-2

    # Small-shape check (single padded tile).
    batch = 8
    attr = jax.random.normal(k_attr, (batch, feature_dim), jnp.float32)
    obj = jax.random.normal(k_obj, (batch, feature_dim), jnp.float32)
    out = jax.block_until_ready(combination_discriminator_forward(attr, obj, params))
    ref = _reference(attr, obj, params)
    assert out.shape == (batch, 1)
    assert jnp.allclose(out, ref, atol=TOL, rtol=TOL)

    # Multi-tile check: exercises the batch grid, resident weights, and the
    # two-step grid split (tb = ceil(B/2) rounded to 16 -> grid=(2,)).
    batch2 = 2000
    attr2 = jax.random.normal(k_attr2, (batch2, feature_dim), jnp.float32)
    obj2 = jax.random.normal(k_obj2, (batch2, feature_dim), jnp.float32)
    out2 = jax.block_until_ready(combination_discriminator_forward(attr2, obj2, params))
    ref2 = _reference(attr2, obj2, params)
    assert out2.shape == (batch2, 1)
    assert jnp.allclose(out2, ref2, atol=TOL, rtol=TOL)

    print("KERNEL_OK")
</pallas_src>

<mosaic_0001>
module attributes {stable_mosaic.version = 11 : i64} {
  func.func @_mlp_kernel(%arg0: i32, %arg1: memref<16x64xbf16, #tpu.memory_space<vmem>>, %arg2: memref<64x128xbf16, #tpu.memory_space<vmem>>, %arg3: memref<1x128xf32, #tpu.memory_space<vmem>>, %arg4: memref<128x64xbf16, #tpu.memory_space<vmem>>, %arg5: memref<1x64xf32, #tpu.memory_space<vmem>>, %arg6: memref<1x64xf32, #tpu.memory_space<vmem>>, %arg7: memref<1x1xf32, #tpu.memory_space<vmem>>, %arg8: memref<16x1xf32, #tpu.memory_space<vmem>>) attributes {dimension_semantics = [#tpu.dimension_semantics<parallel>], iteration_bounds = array<i64: 1>, scalar_prefetch = 0 : i64, scratch_operands = 0 : i64, tpu.core_type = #tpu.core_type<tc>, window_params = [{transform_indices = @transform_0, window_bounds = array<i64: 16, 64>}, {pipeline_mode = #tpu.pipeline_mode<synchronous>, transform_indices = @transform_1, window_bounds = array<i64: 64, 128>}, {pipeline_mode = #tpu.pipeline_mode<synchronous>, transform_indices = @transform_2, window_bounds = array<i64: 1, 128>}, {pipeline_mode = #tpu.pipeline_mode<synchronous>, transform_indices = @transform_3, window_bounds = array<i64: 128, 64>}, {pipeline_mode = #tpu.pipeline_mode<synchronous>, transform_indices = @transform_4, window_bounds = array<i64: 1, 64>}, {pipeline_mode = #tpu.pipeline_mode<synchronous>, transform_indices = @transform_5, window_bounds = array<i64: 1, 64>}, {pipeline_mode = #tpu.pipeline_mode<synchronous>, transform_indices = @transform_6, window_bounds = array<i64: 1, 1>}, {transform_indices = @transform_7, window_bounds = array<i64: 16, 1>}]} {
    %c0 = arith.constant 0 : index
    %c0_0 = arith.constant 0 : index
    %0 = vector.load %arg1[%c0, %c0_0] : memref<16x64xbf16, #tpu.memory_space<vmem>>, vector<16x64xbf16>
    %c0_1 = arith.constant 0 : index
    %c0_2 = arith.constant 0 : index
    %1 = vector.load %arg2[%c0_1, %c0_2] : memref<64x128xbf16, #tpu.memory_space<vmem>>, vector<64x128xbf16>
    %cst = arith.constant dense<0.000000e+00> : vector<16x128xf32>
    %2 = tpu.matmul %0, %1, %cst {dimension_numbers = #tpu.dot_dimension_numbers<[1], [0], [0], [1], [0, 0, 1, 1], [], []>} : vector<16x64xbf16>, vector<64x128xbf16>, vector<16x128xf32> -> vector<16x128xf32>
    %c0_3 = arith.constant 0 : index
    %c0_4 = arith.constant 0 : index
    %3 = vector.load %arg3[%c0_3, %c0_4] : memref<1x128xf32, #tpu.memory_space<vmem>>, vector<1x128xf32>
    %4 = vector.broadcast %3 : vector<1x128xf32> to vector<16x128xf32>
    %5 = arith.addf %2, %4 : vector<16x128xf32>
    %cst_5 = arith.constant 0.000000e+00 : f32
    %6 = vector.broadcast %cst_5 : f32 to vector<16x128xf32>
    %7 = arith.maximumf %5, %6 : vector<16x128xf32>
    %8 = arith.truncf %7 : vector<16x128xf32> to vector<16x128xbf16>
    %c0_6 = arith.constant 0 : index
    %c0_7 = arith.constant 0 : index
    %9 = vector.load %arg4[%c0_6, %c0_7] : memref<128x64xbf16, #tpu.memory_space<vmem>>, vector<128x64xbf16>
    %cst_8 = arith.constant dense<0.000000e+00> : vector<16x64xf32>
    %10 = tpu.matmul %8, %9, %cst_8 {dimension_numbers = #tpu.dot_dimension_numbers<[1], [0], [0], [1], [0, 0, 1, 1], [], []>} : vector<16x128xbf16>, vector<128x64xbf16>, vector<16x64xf32> -> vector<16x64xf32>
    %c0_9 = arith.constant 0 : index
    %c0_10 = arith.constant 0 : index
    %11 = vector.load %arg5[%c0_9, %c0_10] : memref<1x64xf32, #tpu.memory_space<vmem>>, vector<1x64xf32>
    %12 = vector.broadcast %11 : vector<1x64xf32> to vector<16x64xf32>
    %13 = arith.addf %10, %12 : vector<16x64xf32>
    %cst_11 = arith.constant 0.000000e+00 : f32
    %14 = vector.broadcast %cst_11 : f32 to vector<16x64xf32>
    %15 = arith.maximumf %13, %14 : vector<16x64xf32>
    %c0_12 = arith.constant 0 : index
    %c0_13 = arith.constant 0 : index
    %16 = vector.load %arg6[%c0_12, %c0_13] : memref<1x64xf32, #tpu.memory_space<vmem>>, vector<1x64xf32>
    %17 = vector.broadcast %16 : vector<1x64xf32> to vector<16x64xf32>
    %18 = arith.mulf %15, %17 : vector<16x64xf32>
    %cst_14 = arith.constant dense<0.000000e+00> : vector<16xf32>
    %19 = vector.multi_reduction <add>, %18, %cst_14 [1] : vector<16x64xf32> to vector<16xf32>
    %20 = vector.shape_cast %19 : vector<16xf32> to vector<16x1xf32>
    %c0_15 = arith.constant 0 : index
    %c0_16 = arith.constant 0 : index
    %21 = vector.load %arg7[%c0_15, %c0_16] : memref<1x1xf32, #tpu.memory_space<vmem>>, vector<1x1xf32>
    %22 = vector.broadcast %21 : vector<1x1xf32> to vector<16x1xf32>
    %23 = arith.addf %20, %22 : vector<16x1xf32>
    %24 = arith.negf %23 : vector<16x1xf32>
    %25 = math.exp %24 : vector<16x1xf32>
    %cst_17 = arith.constant 1.000000e+00 : f32
    %26 = vector.broadcast %cst_17 : f32 to vector<16x1xf32>
    %27 = arith.addf %26, %25 : vector<16x1xf32>
    %28 = arith.divf %26, %27 : vector<16x1xf32>
    %c0_18 = arith.constant 0 : index
    %c0_19 = arith.constant 0 : index
    %29 = vector.load %arg8[%c0_18, %c0_19] : memref<16x1xf32, #tpu.memory_space<vmem>>, vector<16x1xf32>
    tpu.vector_store %arg8[%c0_18, %c0_19], %28 {strides = array<i32>} : memref<16x1xf32, #tpu.memory_space<vmem>>, vector<16x1xf32>,
    return
  }
  func.func @transform_0(%arg0: i32) -> (i32, i32) {
    %c0_i32 = arith.constant 0 : i32
    %c0_i32_0 = arith.constant 0 : i32
    return %arg0, %c0_i32 : i32, i32
  }
  func.func @transform_1(%arg0: i32) -> (i32, i32) {
    %c0_i32 = arith.constant 0 : i32
    %c0_i32_0 = arith.constant 0 : i32
    %c0_i32_1 = arith.constant 0 : i32
    return %c0_i32, %c0_i32_0 : i32, i32
  }
  func.func @transform_2(%arg0: i32) -> (i32, i32) {
    %c0_i32 = arith.constant 0 : i32
    %c0_i32_0 = arith.constant 0 : i32
    %c0_i32_1 = arith.constant 0 : i32
    return %c0_i32, %c0_i32_0 : i32, i32
  }
  func.func @transform_3(%arg0: i32) -> (i32, i32) {
    %c0_i32 = arith.constant 0 : i32
    %c0_i32_0 = arith.constant 0 : i32
    %c0_i32_1 = arith.constant 0 : i32
    return %c0_i32, %c0_i32_0 : i32, i32
  }
  func.func @transform_4(%arg0: i32) -> (i32, i32) {
    %c0_i32 = arith.constant 0 : i32
    %c0_i32_0 = arith.constant 0 : i32
    %c0_i32_1 = arith.constant 0 : i32
    return %c0_i32, %c0_i32_0 : i32, i32
  }
  func.func @transform_5(%arg0: i32) -> (i32, i32) {
    %c0_i32 = arith.constant 0 : i32
    %c0_i32_0 = arith.constant 0 : i32
    %c0_i32_1 = arith.constant 0 : i32
    return %c0_i32, %c0_i32_0 : i32, i32
  }
  func.func @transform_6(%arg0: i32) -> (i32, i32) {
    %c0_i32 = arith.constant 0 : i32
    %c0_i32_0 = arith.constant 0 : i32
    %c0_i32_1 = arith.constant 0 : i32
    return %c0_i32, %c0_i32_0 : i32, i32
  }
  func.func @transform_7(%arg0: i32) -> (i32, i32) {
    %c0_i32 = arith.constant 0 : i32
    %c0_i32_0 = arith.constant 0 : i32
    return %arg0, %c0_i32 : i32, i32
  }
}

</mosaic_0001>

<bundles_post_ra>
// kernel: tpu_custom_call.1
= control target key start
LH: loop header
LB: loop body
LE: loop exit
PB: predicated region body
PF: predicated region fallthrough
CT: control target
= control target key end

     0   :  { %v369_v0 = vmov 0.0   ;;  %vm370_vm0 = vmmov 0   ;;  %vm75_vm1 = vcmask 523264   ;;  %vm273_vm2 = vcmask 7168   ;;  %s471_s1 = inlined_call_operand.vmem [shape: bf16[64,128], index: 1, kind: input, shape index: {}]   ;;  %s472_s3 = inlined_call_operand.vmem [shape: bf16[128,64], index: 3, kind: input, shape index: {}]   ;;  %s473_s0 = inlined_call_operand.vmem [shape: bf16[16,64], index: 0, kind: input, shape index: {}]   ;;  %s474_s2 = inlined_call_operand.vmem [shape: f32[1,128], index: 2, kind: input, shape index: {}]   ;;  %s475_s6 = inlined_call_operand.<no memory space> [shape: f32[1,1], index: 6, kind: input, shape index: {}]   ;;  %s476_s4 = inlined_call_operand.vmem [shape: f32[1,64], index: 4, kind: input, shape index: {}]   ;;  %s477_s5 = inlined_call_operand.vmem [shape: f32[1,64], index: 5, kind: input, shape index: {}]   ;;  %s478_s7 = inlined_call_operand.vmem [shape: f32[16,1], index: 7, kind: output, shape index: {}]  }
   0x1   :  { %314 = vmatprep.subr.bf16.mxu0 %v369_v0  ;;  %v348_v1 = vld [vmem:[%s471_s1] sm:$0xff]   ;;  %322 = vmatprep.mubr.msk.bf16.mxu0 %vm370_vm0, %v369_v0  ;;  %v349_v2 = vld [vmem:[%s471_s1 + $0x8] sm:$0xff]   ;;  %v350_v4 = vld [vmem:[%s471_s1 + $0x10] sm:$0xff]   ;;  %v12_v24 = vstv %s475_s6 }
   0x2   :  { %326 = vmatprep.subr.bf16.mxu1 %v369_v0  ;;  %342 = vmatprep.mubr.msk.bf16.mxu1 %vm370_vm0, %v369_v0  ;;  %v353_v3 = vld [vmem:[%s472_s3] sm:$0xff]   ;;  %v354_v5 = vld [vmem:[%s472_s3 + $0x8] sm:$0xff]   ;;  %v351_v6 = vld [vmem:[%s471_s1 + $0x18] sm:$0xff]   ;;  %13 = vst [vmem:[#allocation2] sm:$0x1] %v12_v24 }
   0x3   :  { %315 = vmatpush3.bf16.msra.mxu0 %v348_v1  ;;  %327 = vmatpush3.bf16.msra.mxu1 %v353_v3  ;;  %v355_v7 = vld [vmem:[%s472_s3 + $0x10] sm:$0xff]   ;;  %v352_v8 = vld [vmem:[%s473_s0] sm:$0xff]   ;;  %v356_v9 = vld [vmem:[%s472_s3 + $0x18] sm:$0xff]  }
   0x4   :  { %316 = vmatprep.subr.bf16.mxu0 %v369_v0  ;;  %328 = vmatprep.subr.bf16.mxu1 %v369_v0  ;;  %v357_v10 = vld [vmem:[%s472_s3 + $0x20] sm:$0xff]   ;;  %v358_v11 = vld [vmem:[%s472_s3 + $0x28] sm:$0xff]   ;;  %v359_v12 = vld [vmem:[%s472_s3 + $0x30] sm:$0xff]  }
   0x5   :  { %v360_v13 = vld [vmem:[%s472_s3 + $0x38] sm:$0xff]   ;;  %v280_v14 = vld [vmem:[%s474_s2] ss:$0 sm:$0xff] }
   0x6   :  { %v287_v25 = vld [vmem:[%s476_s4] ss:$0 sm:$0xff] }
   0x7   :  { %317 = vmatpush3.bf16.msra.mxu0 %v349_v2  ;;  %329 = vmatpush3.bf16.msra.mxu1 %v354_v5  ;;  %v296_v30 = vld [vmem:[%s477_s5] ss:$0 sm:$0xff] }
   0x8   :  { %318 = vmatprep.subr.bf16.mxu0 %v369_v0  ;;  %330 = vmatprep.subr.bf16.mxu1 %v369_v0 }
   0x9   :  { %v297_v39 = vld [vmem:[#allocation2] ss:$0 sm:$0xff] }
   0xb   :  { %319 = vmatpush3.bf16.msra.mxu0 %v350_v4  ;;  %331 = vmatpush3.bf16.msra.mxu1 %v355_v7 }
   0xc   :  { %320 = vmatprep.subr.bf16.mxu0 %v369_v0  ;;  %332 = vmatprep.subr.bf16.mxu1 %v369_v0 }
   0xf   :  { %321 = vmatpush3.bf16.msra.mxu0 %v351_v6  ;;  %333 = vmatpush3.bf16.msra.mxu1 %v356_v9 }
  0x10   :  { %334 = vmatprep.subr.bf16.mxu1 %v369_v0 }
  0x12   :  { %323 = vmatmul.mubr.msk.bf16.vlgmr.msra.gmra.mrb[0].mxu0 %vm75_vm1, %v352_v8 }
  0x13   :  { %335 = vmatpush3.bf16.msra.mxu1 %v357_v10 }
  0x14   :  { %336 = vmatprep.subr.bf16.mxu1 %v369_v0 }
  0x17   :  { %337 = vmatpush3.bf16.msra.mxu1 %v358_v11 }
  0x18   :  { %338 = vmatprep.subr.bf16.mxu1 %v369_v0 }
  0x1b   :  { %339 = vmatpush3.bf16.msra.mxu1 %v359_v12 }
  0x1c   :  { %340 = vmatprep.subr.bf16.mxu1 %v369_v0 }
  0x1f   :  { %341 = vmatpush3.bf16.msra.mxu1 %v360_v13 }
  0xe5   :  { %v113_v15 = vpop.f32.mrb[0].mxu0 }
  0xe6   :  { %v114_v16 = vadd.f32 %v280_v14, %v113_v15  ;;  %v324_v17 = vpop.f32.mrb[1].mxu0 }
  0xe7   :  { %v116_v18 = vpop.f32.mrb[2].mxu0 }
  0xe8   :  { %v117_v19 = vadd.f32 %v280_v14, %v116_v18  ;;  %v325_v20 = vpop.f32.mrb[3].mxu0  ;;  %v120_v21 = vmax.f32 %v114_v16, 0.0 }
  0xea   :  { %v121_v22 = vmax.f32 %v117_v19, 0.0 }
  0xec   :  { %v122_v23 = vpack.c.bf16 %v121_v22, %v120_v21 }
  0xee   :  { %343 = vmatmul.mubr.bf16.vlgmr.msra.gmra.mrb[0].mxu1 %v122_v23 }
 0x1c1   :  { %v228_v26 = vpop.f32.mrb[0].mxu1 }
 0x1c2   :  { %v229_v27 = vadd.f32 %v287_v25, %v228_v26  ;;  %v344_v28 = vpop.f32.mrb[1].mxu1 }
 0x1c3   :  { %v231_v29 = vpop.f32.mrb[2].mxu1 }
 0x1c4   :  { %v235_v31 = vmax.f32 %v229_v27, 0.0  ;;  %v232_v32 = vadd.f32 %v287_v25, %v231_v29  ;;  %v345_v33 = vpop.f32.mrb[3].mxu1 }
 0x1c6   :  { %v236_v34 = vmax.f32 %v232_v32, 0.0  ;;  %v244_v35 = vmul.f32 %v296_v30, %v235_v31 }
 0x1c8   :  { %v246_v36 = vsel %vm75_vm1, %v244_v35, 0.0  ;;  %v245_v37 = vmul.f32 %v296_v30, %v236_v34 }
 0x1c9   :  { %247 = vadd.xlane.f32.xlu0 %v246_v36 }
 0x1ca   :  { %v249_v38 = vsel %vm75_vm1, %v245_v37, 0.0 }
 0x1cd   :  { %250 = vadd.xlane.f32.xlu0 %v249_v38 }
 0x256   :  { %v248_v40 = vpop.xlane.xlu0 %247 }
 0x257   :  { %v259_v41 = vadd.f32 %v297_v39, %v248_v40 }
 0x259   :  { %v298_v42 = vmul.f32 -1.442695, %v259_v41 }
 0x25a   :  { %v251_v43 = vpop.xlane.xlu0 %250 }
 0x25b   :  { %361 = vpow2.f32 %v298_v42  ;;  %v260_v44 = vadd.f32 %v297_v39, %v251_v43 }
 0x25d   :  { %v299_v45 = vmul.f32 -1.442695, %v260_v44 }
 0x25f   :  { %363 = vpow2.f32 %v299_v45 }
 0x265   :  { %v362_v46 = vpop.eup %361 }
 0x266   :  { %v267_v47 = vadd.f32 1.0, %v362_v46 }
 0x268   :  { %365 = vrcp.f32 %v267_v47 }
 0x269   :  { %v364_v48 = vpop.eup %363 }
 0x26a   :  { %v268_v49 = vadd.f32 1.0, %v364_v48 }
 0x26c   :  { %367 = vrcp.f32 %v268_v49 }
 0x272   :  { %v366_v50 = vpop.eup %365 }
 0x273   :  { %274 = vst.msk [vmem:[%s478_s7] sm:$0xff] %vm273_vm2, %v366_v50 }
 0x276   :  { %v368_v51 = vpop.eup %367 }
 0x277   :  { %275 = vst.msk [vmem:[%s478_s7 + $0x8] sm:$0xff] %vm273_vm2, %v368_v51 }

</bundles_post_ra>
